<compile_context>
chip_gen: v5e
topology: v5e:2x2
jax: 0.10.0
libtpu: 0.0.40
codegen_flags: <defaults>
</compile_context>

<pallas_src>
import functools
import math

import jax
import jax.numpy as jnp
from jax.experimental import pallas as pl
from jax.experimental.pallas import tpu as pltpu


def _local_rnn_kernel(x_ref, wih_t_ref, whh_t_ref, bias_ref, out_ref, *,
                      ksize, batch_tile):
    # x_ref:     (TB, L, D)  inputs for `batch_tile` batch elements (compute dtype)
    # wih_t_ref: (D, D)      W_ih^T  (pre-transposed in the wrapper)
    # whh_t_ref: (D, D)      W_hh^T  (pre-transposed in the wrapper)
    # bias_ref:  (1, D)      b_ih + b_hh (f32, pre-added in the wrapper)
    # out_ref:   (TB, L, D)
    TB, L, D = out_ref.shape
    M = TB * L

    xf = x_ref[...].reshape(M, D)            # flatten batch into matmul rows
    wih_t = wih_t_ref[...]
    whh_t = whh_t_ref[...]
    bias = bias_ref[...]                     # (1, D) f32
    mm_dtype = wih_t.dtype                   # f32 or bf16 (MXU input dtype)

    # Input projection: done ONCE for all ksize recurrence steps.
    u = jnp.dot(xf, wih_t, preferred_element_type=jnp.float32) + bias   # (M, D) f32

    # Row index within each batch element (only needed to fix rows that would
    # otherwise leak across batch boundaries after the flat sublane shift).
    if batch_tile > 1:
        rlocal = jax.lax.broadcasted_iota(jnp.int32, (M, D), 0) % L

    h = jnp.zeros((M, D), jnp.float32)
    # ksize is small & static -> unrolled loop (ksize RNN steps, 1 matmul each).
    for s in range(ksize):
        p = ksize - 1 - s                    # causal shift for this window step
        if p == 0:
            u_s = u
        else:
            # shift down by p rows; shifted-in rows take the bias value
            # (== projection of the zero padding).
            u_s = jnp.concatenate(
                [jnp.broadcast_to(bias, (p, D)), u[:M - p, :]], axis=0)
            if batch_tile > 1:
                # first p rows of every batch element must also be bias
                # (the flat shift pulled in the previous element's tail).
                u_s = jnp.where(rlocal < p, bias, u_s)
        pre = u_s + jnp.dot(h.astype(mm_dtype), whh_t,
                            preferred_element_type=jnp.float32)
        h = jnp.tanh(pre)                    # f32 tanh (EUP), f32 state

    out_ref[...] = h.reshape(TB, L, D).astype(out_ref.dtype)


def _pick_batch_tile(B, L, D, itemsize):
    """Largest divisor of B fitting a conservative VMEM budget, preferring >= 2 grid steps."""
    budget = 8 * 1024 * 1024                       # per-step in+out blocks, double-buffered
    per_elem = L * D * (itemsize + 4) * 2          # input (compute dtype) + f32 output, x2 buffers
    cands = [t for t in range(1, B + 1) if B % t == 0 and t * per_elem <= budget]
    if not cands:
        return 1
    pref = [t for t in cands if B // t >= 2]       # keep >= 2 parallel steps (megacore / v7x 2 TCs)
    return max(pref) if pref else max(cands)


def local_rnn_forward(x, w_ih, w_hh, b_ih, b_hh, ksize, *,
                      batch_tile=None, compute_dtype=jnp.float32):
    """x: (B, L, D). Equivalent to LocalRNN(D, D, 'RNN', ksize).forward (PyTorch)."""
    B, L, D = x.shape
    out_dtype = x.dtype

    # One-time parameter prep hoisted out of the (sequential) kernel grid.
    wih_t = jnp.asarray(w_ih, jnp.float32).T.astype(compute_dtype)      # (D, D)
    whh_t = jnp.asarray(w_hh, jnp.float32).T.astype(compute_dtype)      # (D, D)
    bias = (jnp.asarray(b_ih, jnp.float32)
            + jnp.asarray(b_hh, jnp.float32)).reshape(1, D)             # (1, D) f32
    x_mm = x.astype(compute_dtype)

    if batch_tile is None:
        batch_tile = _pick_batch_tile(B, L, D, jnp.dtype(compute_dtype).itemsize)
    assert B % batch_tile == 0, "batch_tile must divide batch size"
    grid = (B // batch_tile,)

    kernel = functools.partial(_local_rnn_kernel, ksize=ksize, batch_tile=batch_tile)

    return pl.pallas_call(
        kernel,
        out_shape=jax.ShapeDtypeStruct((B, L, D), out_dtype),
        grid=grid,
        in_specs=[
            pl.BlockSpec((batch_tile, L, D), lambda b: (b, 0, 0)),   # x (no HBM pad copy)
            pl.BlockSpec((D, D), lambda b: (0, 0)),                  # W_ih^T
            pl.BlockSpec((D, D), lambda b: (0, 0)),                  # W_hh^T
            pl.BlockSpec((1, D), lambda b: (0, 0)),                  # b_ih + b_hh
        ],
        out_specs=pl.BlockSpec((batch_tile, L, D), lambda b: (b, 0, 0)),
        compiler_params=pltpu.CompilerParams(
            dimension_semantics=("parallel",),
            vmem_limit_bytes=32 * 1024 * 1024,
        ),
    )(x_mm, wih_t, whh_t, bias)


def local_rnn_reference(x, w_ih, w_hh, b_ih, b_hh, ksize):
    """Pure-JAX reference mirroring the PyTorch forward (windows materialized explicitly)."""
    B, L, D = x.shape
    xpad = jnp.concatenate([jnp.zeros((B, ksize - 1, D), x.dtype), x], axis=1)
    windows = jnp.stack([xpad[:, s:s + L, :] for s in range(ksize)], axis=2)  # (B,L,K,D)
    win = windows.reshape(B * L, ksize, D)
    h = jnp.zeros((B * L, D), jnp.float32)
    for s in range(ksize):
        h = jnp.tanh(win[:, s, :] @ w_ih.T + b_ih + h @ w_hh.T + b_hh)
    return h.reshape(B, L, D)


if __name__ == "__main__":
    # Small shapes consistent with the module: input_dim == output_dim == d_model.
    B, L, D, KSIZE = 2, 16, 32, 4

    key = jax.random.PRNGKey(0)
    kx, k1, k2, k3, k4 = jax.random.split(key, 5)

    x = jax.random.normal(kx, (B, L, D), dtype=jnp.float32)

    # Parameter shapes mirroring nn.RNN(D, D): weight_ih/hh (D, D), bias_ih/hh (D,)
    bound = 1.0 / math.sqrt(D)
    w_ih = jax.random.uniform(k1, (D, D), jnp.float32, -bound, bound)
    w_hh = jax.random.uniform(k2, (D, D), jnp.float32, -bound, bound)
    b_ih = jax.random.uniform(k3, (D,), jnp.float32, -bound, bound)
    b_hh = jax.random.uniform(k4, (D,), jnp.float32, -bound, bound)

    ref = local_rnn_reference(x, w_ih, w_hh, b_ih, b_hh, KSIZE)

    # 1) Default f32 path (auto batch tile -> grid=(2,), one batch element per step).
    out = jax.block_until_ready(local_rnn_forward(x, w_ih, w_hh, b_ih, b_hh, KSIZE))
    assert out.shape == (B, L, D)
    assert jnp.allclose(out, ref, atol=1e-3, rtol=1e-3), "f32 kernel mismatch vs reference"

    # 2) Multiple batch elements per grid step (exercises flattened-row masking path).
    out_tb = jax.block_until_ready(
        local_rnn_forward(x, w_ih, w_hh, b_ih, b_hh, KSIZE, batch_tile=2))
    assert jnp.allclose(out_tb, ref, atol=1e-3, rtol=1e-3), "batched-tile kernel mismatch"

    # 3) bf16 MXU-input path (v6e/v7x recommendation): f32 accumulation + f32 tanh.
    out_bf16 = jax.block_until_ready(
        local_rnn_forward(x, w_ih, w_hh, b_ih, b_hh, KSIZE, compute_dtype=jnp.bfloat16))
    assert jnp.allclose(out_bf16, ref, atol=5e-2, rtol=5e-2), "bf16 kernel mismatch"

    print("KERNEL_OK")
</pallas_src>

<mosaic_0001>
module attributes {stable_mosaic.version = 11 : i64} {
  func.func @_local_rnn_kernel(%arg0: i32, %arg1: memref<1x16x32xf32, #tpu.memory_space<vmem>>, %arg2: memref<32x32xf32, #tpu.memory_space<vmem>>, %arg3: memref<32x32xf32, #tpu.memory_space<vmem>>, %arg4: memref<1x32xf32, #tpu.memory_space<vmem>>, %arg5: memref<1x16x32xf32, #tpu.memory_space<vmem>>) attributes {dimension_semantics = [#tpu.dimension_semantics<parallel>], iteration_bounds = array<i64: 2>, scalar_prefetch = 0 : i64, scratch_operands = 0 : i64, tpu.core_type = #tpu.core_type<tc>, window_params = [{transform_indices = @transform_0, window_bounds = array<i64: 1, 16, 32>}, {pipeline_mode = #tpu.pipeline_mode<synchronous>, transform_indices = @transform_1, window_bounds = array<i64: 32, 32>}, {pipeline_mode = #tpu.pipeline_mode<synchronous>, transform_indices = @transform_2, window_bounds = array<i64: 32, 32>}, {pipeline_mode = #tpu.pipeline_mode<synchronous>, transform_indices = @transform_3, window_bounds = array<i64: 1, 32>}, {transform_indices = @transform_4, window_bounds = array<i64: 1, 16, 32>}]} {
    %c0 = arith.constant 0 : index
    %c0_0 = arith.constant 0 : index
    %c0_1 = arith.constant 0 : index
    %0 = vector.load %arg1[%c0, %c0_0, %c0_1] : memref<1x16x32xf32, #tpu.memory_space<vmem>>, vector<1x16x32xf32>
    %1 = vector.shape_cast %0 : vector<1x16x32xf32> to vector<16x32xf32>
    %c0_2 = arith.constant 0 : index
    %c0_3 = arith.constant 0 : index
    %2 = vector.load %arg2[%c0_2, %c0_3] : memref<32x32xf32, #tpu.memory_space<vmem>>, vector<32x32xf32>
    %c0_4 = arith.constant 0 : index
    %c0_5 = arith.constant 0 : index
    %3 = vector.load %arg3[%c0_4, %c0_5] : memref<32x32xf32, #tpu.memory_space<vmem>>, vector<32x32xf32>
    %c0_6 = arith.constant 0 : index
    %c0_7 = arith.constant 0 : index
    %4 = vector.load %arg4[%c0_6, %c0_7] : memref<1x32xf32, #tpu.memory_space<vmem>>, vector<1x32xf32>
    %cst = arith.constant dense<0.000000e+00> : vector<16x32xf32>
    %5 = tpu.matmul %1, %2, %cst {dimension_numbers = #tpu.dot_dimension_numbers<[1], [0], [0], [1], [0, 0, 1, 1], [], []>} : vector<16x32xf32>, vector<32x32xf32>, vector<16x32xf32> -> vector<16x32xf32>
    %6 = vector.broadcast %4 : vector<1x32xf32> to vector<16x32xf32>
    %7 = arith.addf %5, %6 : vector<16x32xf32>
    %cst_8 = arith.constant 0.000000e+00 : f32
    %8 = vector.broadcast %cst_8 : f32 to vector<16x32xf32>
    %9 = vector.shape_cast %4 : vector<1x32xf32> to vector<1x32xf32>
    %10 = vector.broadcast %9 : vector<1x32xf32> to vector<3x32xf32>
    %11 = vector.extract_strided_slice %7 {offsets = [0, 0], sizes = [13, 32], strides = [1, 1]} : vector<16x32xf32> to vector<13x32xf32>
    %12 = tpu.concatenate %10, %11 in 0 : vector<3x32xf32>, vector<13x32xf32> -> vector<16x32xf32>
    %cst_9 = arith.constant dense<0.000000e+00> : vector<16x32xf32>
    %13 = tpu.matmul %8, %3, %cst_9 {dimension_numbers = #tpu.dot_dimension_numbers<[1], [0], [0], [1], [0, 0, 1, 1], [], []>} : vector<16x32xf32>, vector<32x32xf32>, vector<16x32xf32> -> vector<16x32xf32>
    %14 = arith.addf %12, %13 : vector<16x32xf32>
    %15 = math.tanh %14 : vector<16x32xf32>
    %16 = vector.shape_cast %4 : vector<1x32xf32> to vector<1x32xf32>
    %17 = vector.broadcast %16 : vector<1x32xf32> to vector<2x32xf32>
    %18 = vector.extract_strided_slice %7 {offsets = [0, 0], sizes = [14, 32], strides = [1, 1]} : vector<16x32xf32> to vector<14x32xf32>
    %19 = tpu.concatenate %17, %18 in 0 : vector<2x32xf32>, vector<14x32xf32> -> vector<16x32xf32>
    %cst_10 = arith.constant dense<0.000000e+00> : vector<16x32xf32>
    %20 = tpu.matmul %15, %3, %cst_10 {dimension_numbers = #tpu.dot_dimension_numbers<[1], [0], [0], [1], [0, 0, 1, 1], [], []>} : vector<16x32xf32>, vector<32x32xf32>, vector<16x32xf32> -> vector<16x32xf32>
    %21 = arith.addf %19, %20 : vector<16x32xf32>
    %22 = math.tanh %21 : vector<16x32xf32>
    %23 = vector.extract_strided_slice %7 {offsets = [0, 0], sizes = [15, 32], strides = [1, 1]} : vector<16x32xf32> to vector<15x32xf32>
    %24 = tpu.concatenate %4, %23 in 0 : vector<1x32xf32>, vector<15x32xf32> -> vector<16x32xf32>
    %cst_11 = arith.constant dense<0.000000e+00> : vector<16x32xf32>
    %25 = tpu.matmul %22, %3, %cst_11 {dimension_numbers = #tpu.dot_dimension_numbers<[1], [0], [0], [1], [0, 0, 1, 1], [], []>} : vector<16x32xf32>, vector<32x32xf32>, vector<16x32xf32> -> vector<16x32xf32>
    %26 = arith.addf %24, %25 : vector<16x32xf32>
    %27 = math.tanh %26 : vector<16x32xf32>
    %cst_12 = arith.constant dense<0.000000e+00> : vector<16x32xf32>
    %28 = tpu.matmul %27, %3, %cst_12 {dimension_numbers = #tpu.dot_dimension_numbers<[1], [0], [0], [1], [0, 0, 1, 1], [], []>} : vector<16x32xf32>, vector<32x32xf32>, vector<16x32xf32> -> vector<16x32xf32>
    %29 = arith.addf %7, %28 : vector<16x32xf32>
    %30 = math.tanh %29 : vector<16x32xf32>
    %31 = vector.shape_cast %30 : vector<16x32xf32> to vector<1x16x32xf32>
    %c0_13 = arith.constant 0 : index
    %c0_14 = arith.constant 0 : index
    %c0_15 = arith.constant 0 : index
    %32 = vector.load %arg5[%c0_13, %c0_14, %c0_15] : memref<1x16x32xf32, #tpu.memory_space<vmem>>, vector<1x16x32xf32>
    tpu.vector_store %arg5[%c0_13, %c0_14, %c0_15], %31 {strides = array<i32>} : memref<1x16x32xf32, #tpu.memory_space<vmem>>, vector<1x16x32xf32>,
    return
  }
  func.func @transform_0(%arg0: i32) -> (i32, i32, i32) {
    %c0_i32 = arith.constant 0 : i32
    %c0_i32_0 = arith.constant 0 : i32
    %c0_i32_1 = arith.constant 0 : i32
    return %arg0, %c0_i32, %c0_i32_0 : i32, i32, i32
  }
  func.func @transform_1(%arg0: i32) -> (i32, i32) {
    %c0_i32 = arith.constant 0 : i32
    %c0_i32_0 = arith.constant 0 : i32
    %c0_i32_1 = arith.constant 0 : i32
    return %c0_i32, %c0_i32_0 : i32, i32
  }
  func.func @transform_2(%arg0: i32) -> (i32, i32) {
    %c0_i32 = arith.constant 0 : i32
    %c0_i32_0 = arith.constant 0 : i32
    %c0_i32_1 = arith.constant 0 : i32
    return %c0_i32, %c0_i32_0 : i32, i32
  }
  func.func @transform_3(%arg0: i32) -> (i32, i32) {
    %c0_i32 = arith.constant 0 : i32
    %c0_i32_0 = arith.constant 0 : i32
    %c0_i32_1 = arith.constant 0 : i32
    return %c0_i32, %c0_i32_0 : i32, i32
  }
  func.func @transform_4(%arg0: i32) -> (i32, i32, i32) {
    %c0_i32 = arith.constant 0 : i32
    %c0_i32_0 = arith.constant 0 : i32
    %c0_i32_1 = arith.constant 0 : i32
    return %arg0, %c0_i32, %c0_i32_0 : i32, i32, i32
  }
}

</mosaic_0001>

<bundles_post_ra>
// kernel: tpu_custom_call.1
= control target key start
LH: loop header
LB: loop body
LE: loop exit
PB: predicated region body
PF: predicated region fallthrough
CT: control target
= control target key end

     0   :  { %9 = vsyncpa [#allocation3], 0  ;;  %s1042_s0 = inlined_call_operand.hbm [shape: f32[2,16,32], index: 0, kind: input, shape index: {}]   ;;  %s1043_s1 = inlined_call_operand.hbm [shape: f32[32,32], index: 1, kind: input, shape index: {}]   ;;  %s1044_s2 = inlined_call_operand.hbm [shape: f32[32,32], index: 2, kind: input, shape index: {}]   ;;  %s1045_s3 = inlined_call_operand.vmem [shape: f32[1,32], index: 3, kind: input, shape index: {}]   ;;  %s1046_s4 = inlined_call_operand.hbm [shape: f32[2,16,32], index: 4, kind: output, shape index: {}]  }
   0x1   :  { %11 = vsyncpa [#allocation3 + $0x1], 0 }
   0x2   :  { %12 = vsyncpa [#allocation6], 0 }
   0x3   :  { %13 = vsyncpa [#allocation4], 0 }
   0x4   :  { %15 = vsyncpa [#allocation4 + $0x1], 0  ;;  %s872_s15 = smov 0   ;;  %s874_s16 = smov 0  }
   0x5   :  { %s876_s17 = smov 0   ;;  %s878_s18 = smov 0  }
   0x6 LB: > { %s893_s19 = sadd.s32 4294967295, %s838_s18   ;;  %s557_s20 = sadd.s32 4294967294, %s838_s18   ;;  %s838_s18 = sphi %s878_s18, %s1056_s18   ;;  %s834_s17 = sphi %s876_s17, %s1055_s17   ;;  %s830_s16 = sphi %s874_s16, %s1054_s16   ;;  %s826_s15 = sphi %s872_s15, %s1053_s15  }
   0x7   : > { %p41_p0 = scmp.ne.s32.totalorder %s830_s16, %s826_s15  ;;  %p42_p1 = scmp.eq.s32.totalorder %s893_s19, 0 }
   0x8   : > { %p128_p2 = scmp.eq.s32.totalorder %s893_s19, 1  ;;  %p134_p3 = scmp.eq.s32.totalorder %s557_s20, 1 }
   0x9   : > { %p902_p4 = por %p42_p1, %p41_p0  ;;  %p558_p5 = scmp.ge.s32.totalorder %s838_s18, 1 }
   0xa   : > { %p907_p6 = por %p134_p3, %p41_p0  ;;  %p141_p7 = scmp.lt.s32.totalorder %s838_s18, 3 }
   0xb   : > { %s152_s25 = sshll.u32 %s1043_s1, 4  ;;  %s840_s27 = smov [#allocation5]   ;;  %s153_s25 = int_to_ptr.hbm [resolvable:$true] %s152_s25 }
   0xc   : > { %p915_p8 = pnand %p558_p5, %p141_p7  ;;  %s154_s28 = sshll.u32 %s840_s27, 4  ;;  %s155_s28 = int_to_ptr.vmem [resolvable:$true] %s154_s28 }
   0xd   : > { %s166_s5 = sshll.u32 %s1044_s2, 4  ;;  %s841_s6 = smov 128   ;;  %s167_s5 = int_to_ptr.hbm [resolvable:$true] %s166_s5 }
   0xe   : > { %p601_p9 = pneg %p915_p8  ;;  %s842_s7 = smov 8  }
   0xf   : > { %s843_s8 = smov [#allocation7]   ;;  %s934_s10 = sadd.s32 1, %s838_s18  }
  0x10   : > { %p602_p10 = pnand %p601_p9, %p42_p1  ;;  %s168_s9 = sshll.u32 %s843_s8, 4  ;;  %s169_s9 = int_to_ptr.vmem [resolvable:$true] %s168_s9 }
  0x11   : > { %s28_s11 = sadd.s32 1, %s834_s17  ;;  %s25_s12 = ssub.s32 %s838_s18, %s934_s10 }
  0x12   : > { %604 = dma.hbm_to_vmem [thread:$0]  (!%p602_p10), %s153_s25, 512, %s155_s28, [#allocation6], %s841_s6, %s841_s6, %s842_s7  }
  0x13   : > { %607 = dma.hbm_to_vmem [thread:$0]  (!%p602_p10), %s167_s5, 512, %s169_s9, [#allocation6], %s841_s6, %s841_s6, %s842_s7  }
  0x14   : > { %p35_p12 = scmp.ne.s32.totalorder %s834_s17, %s830_s16  ;;  %p26_p13 = scmp.eq.s32.totalorder %s25_s12, 0 }
  0x15   : > { %p36_p0 = scmp.eq.s32.totalorder %s838_s18, 0  ;;  %p618_p5 = scmp.lt.s32.totalorder %s838_s18, 2 }
  0x16   : > { %p944_p3 = por %p128_p2, %p35_p12  ;;  %s185_s20 = sand.u32 1, %s834_s17  }
  0x17   : > { %s950_s14 = scalar_select %p26_p13, %s834_s17, %s28_s11  }
  0x18   : > { %p37_p7 = por %p36_p0, %p35_p12  ;;  %s562_s23 = sshll.u32 %s185_s20, 4 }
  0x19   : > { %s583_s24 = sshll.u32 %s838_s18, 4  ;;  %s189_s29 = scalar_lea.vmem [#allocation2], %s562_s23 }
  0x1a   : > { %s194_s28 = scalar_lea.hbm %s1042_s0, %s583_s24  ;;  %s197_s30 = sshll.u32 %s189_s29, 4  ;;  %s198_s30 = int_to_ptr.vmem [resolvable:$true] %s197_s30 }
  0x1b   : > { %s195_s5 = sshll.u32 %s194_s28, 4  ;;  %p957_p2 = pnand %p618_p5, %p37_p7  ;;  %s196_s5 = int_to_ptr.hbm [resolvable:$true] %s195_s5 }
  0x1c   : > { %s186_s9 = scalar_lea.sflag [#allocation3], %s185_s20  ;;  %s738_s11 = sshra.s32 %s196_s5, 4  ;;  %s739_s11 = int_to_ptr.hbm [resolvable:$true] %s738_s11 }
  0x1d   : > { %s740_s12 = scalar_lea.hbm %s739_s11, 16  ;;  %p742_p10 = pneg %p957_p2 }
  0x1e   : > { %p741_p9 = scmp.ne.s32.totalorder %s739_s11, %s740_s12  ;;  %s745_s25 = scalar_lea.hbm %s1042_s0, 32 }
  0x1f   : > { %p746_p0 = scmp.lt.s32.totalorder %s739_s11, %s1042_s0  ;;  %p747_p5 = scmp.lt.s32.totalorder %s745_s25, %s740_s12 }
  0x20   : > { %p743_p12 = pnand %p742_p10, %p741_p9 }
  0x21   : > { %p748_p7 = por %p747_p5, %p746_p0 }
  0x22   : > { %p744_p13 = pneg %p743_p12 }
  0x24   : > { %p749_p11 = pnand %p748_p7, %p744_p13 }
  0x26   : > { %752 = shalt.err (!%p749_p11)
}
  0x27   : > { %611 = dma.hbm_to_vmem [thread:$0]  (!%p957_p2), %s196_s5, 256, %s198_s30, %s186_s9, %s841_s6, %s841_s6, %s842_s7  }
  0x28   : > { %209 = sbr.rel (%p915_p8) target bundleno = 628 (0x274), region = 36  ;;  %s977_s20 = sand.u32 (!%p915_p8), 1, %s830_s16  }
  0x29   : > { %s566_s29 = sshll.u32 (!%p915_p8), %s977_s20, 4  ;;  %s212_s11 = scalar_lea.sflag (!%p915_p8), [#allocation3], %s977_s20 }
  0x2a   : > { %s215_s12 = scalar_lea.vmem (!%p915_p8), [#allocation2], %s566_s29 }
  0x2d   : > { %813 = dma.done.wait (%p902_p4), %s212_s11, 256  }
  0x2e   : > { %815 = vsyncadd (%p902_p4), %s212_s11, 4294967040 }
  0x2f   : > { %817 = dma.done.wait (%p42_p1), [#allocation6], 1024  }
  0x30   : > { %819 = vsyncadd (%p42_p1), [#allocation6], 4294966272  ;;  %v256_v0 = vld [vmem:[#allocation5 + $0x18] sm:$0xff]  ;;  %v255_v1 = vld [vmem:[#allocation5 + $0x10] sm:$0xff]  ;;  %vm265_vm0 = vcmask 261120   ;;  %v844_v10 = vmov 0.0  }
  0x31   : > { %284 = vmatpush.msra.mxu0 %v256_v0  ;;  %585 = vmatpush.msra.mxu1 %v256_v0  ;;  %v254_v2 = vld [vmem:[#allocation5 + $0x8] sm:$0xff]  ;;  %v260_v3 = vld [vmem:[#allocation7 + $0x18] sm:$0xff]  ;;  %v253_v4 = vld [vmem:[#allocation5] sm:$0xff]  ;;  %vm297_vm1 = vcmask 1042432   ;;  %vm334_vm2 = vcmask 1041408   ;;  %vm374_vm3 = vcmask 1040384  }
  0x32   : > { %359 = vmatpush.msra.mxu2 %v260_v3  ;;  %399 = vmatpush.msra.mxu3 %v260_v3  ;;  %v251_v5 = vld [vmem:[%s215_s12] sm:$0xff]  ;;  %v252_v6 = vld [vmem:[%s215_s12 + $0x8] sm:$0xff]  ;;  %s584_s30 = sshll.u32 %s893_s19, 4  ;;  %s250_s24 = scalar_lea.vmem [#allocation8], %s566_s29 }
  0x33   : > { %285 = vmatpush.msra.mxu0 %v255_v1  ;;  %586 = vmatpush.msra.mxu1 %v255_v1  ;;  %v259_v7 = vld [vmem:[#allocation7 + $0x10] sm:$0xff]  ;;  %v258_v8 = vld [vmem:[#allocation7 + $0x8] sm:$0xff]  ;;  %v257_v9 = vld [vmem:[#allocation7] sm:$0xff]  ;;  %s461_s9 = scalar_lea.hbm %s1046_s4, %s584_s30  ;;  %s462_s23 = sshll.u32 %s250_s24, 4  ;;  %s463_s23 = int_to_ptr.vmem [resolvable:$true] %s462_s23 }
  0x34   : > { %360 = vmatpush.msra.mxu2 %v259_v7  ;;  %400 = vmatpush.msra.mxu3 %v259_v7  ;;  %v661_v11 = vld [vmem:[%s1045_s3] ss:$0 sm:$0xff]  ;;  %s464_s25 = sshll.u32 %s461_s9, 4  ;;  %s450_s19 = scalar_lea.sflag [#allocation4], %s977_s20  ;;  %s465_s25 = int_to_ptr.hbm [resolvable:$true] %s464_s25 }
  0x35   : > { %286 = vmatpush.msra.mxu0 %v254_v2  ;;  %587 = vmatpush.msra.mxu1 %v254_v2  ;;  %v261_v36 = vld [vmem:[%s1045_s3] sm:$0x1]  ;;  %s782_s27 = sshra.s32 %s465_s25, 4  ;;  %s788_s12 = scalar_lea.hbm %s1046_s4, 32  ;;  %s783_s27 = int_to_ptr.hbm [resolvable:$true] %s782_s27 }
  0x36   : > { %361 = vmatpush.msra.mxu2 %v258_v8  ;;  %401 = vmatpush.msra.mxu3 %v258_v8  ;;  %s784_s28 = scalar_lea.hbm %s783_s27, 16  ;;  %p789_p11 = scmp.lt.s32.totalorder %s783_s27, %s1046_s4 }
  0x37   : > { %287 = vmatpush.msra.mxu0 %v253_v4  ;;  %588 = vmatpush.msra.mxu1 %v253_v4  ;;  %p785_p1 = scmp.ne.s32.totalorder %s783_s27, %s784_s28  ;;  %p790_p2 = scmp.lt.s32.totalorder %s788_s12, %s784_s28 }
  0x38   : > { %570 = vmatmul.msk.f32.vlgmr.msra.gmra.mxu0 %vm265_vm0, %v251_v5  ;;  %571 = vmatmul.msk.f32.vlgmr.msra.gmra.mxu1 %vm265_vm0, %v252_v6 }
  0x39   : > { %319 = vmatpush.msrb.mxu1 %v260_v3  ;;  %432 = vmatpush.msrb.mxu0 %v260_v3  ;;  %p786_p4 = pnand %p785_p1, %p944_p3  ;;  %p791_p9 = por %p790_p2, %p789_p11 }
  0x3a   : > { %362 = vmatpush.msra.mxu2 %v257_v9  ;;  %402 = vmatpush.msra.mxu3 %v257_v9 }
  0x3b   : > { %320 = vmatpush.msrb.mxu1 %v259_v7  ;;  %433 = vmatpush.msrb.mxu0 %v259_v7  ;;  %p787_p8 = pneg %p786_p4 }
  0x3d   : > { %321 = vmatpush.msrb.mxu1 %v258_v8  ;;  %434 = vmatpush.msrb.mxu0 %v258_v8  ;;  %p792_p10 = pnand %p791_p9, %p787_p8 }
  0x3f   : > { %322 = vmatpush.msrb.mxu1 %v257_v9  ;;  %435 = vmatpush.msrb.mxu0 %v257_v9 }
  0x40   : > { %323 = vmatmul.f32.vlgmr.msrb.gmra.mxu1 %v844_v10 }
  0x48   : > { %326 = vmatmul.f32.gmra.mxu1 %v844_v10 }
  0xb5   : > { %v289_v12 = vpop.f32.mrf.mxu0  ;;  %v292_v13 = vpop.f32.mrf.mxu1 }
  0xb6   : > { %v290_v14 = vadd.f32 %v661_v11, %v289_v12  ;;  %v293_v17 = vadd.f32 %v661_v11, %v292_v13 }
  0xb8   : > { %v298_v15 = vrot.slane %v290_v14, 5  ;;  %v299_v20 = vrot.slane %v293_v17, 5  ;;  %v335_v26 = vrot.slane %v290_v14, 6  ;;  %v336_v30 = vrot.slane %v293_v17, 6 }
  0xb9   : > { %v375_v37 = vrot.slane %v290_v14, 7  ;;  %v376_v41 = vrot.slane %v293_v17, 7 }
  0xba   : > { %v303_v16 = vsel %vm297_vm1, %v661_v11, %v298_v15  ;;  %v300_v21 = vsel %vm297_vm1, %v298_v15, %v299_v20  ;;  %v340_v27 = vsel %vm334_vm2, %v661_v11, %v335_v26  ;;  %v337_v31 = vsel %vm334_vm2, %v335_v26, %v336_v30 }
  0xbb   : > { %v380_v38 = vsel %vm374_vm3, %v261_v36, %v375_v37  ;;  %v377_v42 = vsel %vm374_vm3, %v375_v37, %v376_v41 }
  0xbd   : > { %v324_v18 = vpop.f32.mrf.mxu1 }
  0xbe   : > { %v330_v19 = vadd.f32 %v324_v18, %v303_v16 }
  0xc0   : > { %662 = vtanh.f32 %v330_v19 }
  0xc5   : > { %v327_v22 = vpop.f32.mrf.mxu1 }
  0xc6   : > { %v663_v23 = vpop.eup %662  ;;  %v331_v24 = vadd.f32 %v327_v22, %v300_v21 }
  0xc7   : > { %572 = vmatmul.msk.f32.vlgmr.msra.gmra.mxu2 %vm265_vm0, %v663_v23 }
  0xc8   : > { %664 = vtanh.f32 %v331_v24 }
  0xce   : > { %v665_v25 = vpop.eup %664 }
  0xcf   : > { %573 = vmatmul.msk.f32.gmra.mxu2 %vm265_vm0, %v665_v25 }
 0x14a   : > { %v364_v28 = vpop.f32.mrf.mxu2 }
 0x14b   : > { %v370_v29 = vadd.f32 %v364_v28, %v340_v27 }
 0x14d   : > { %666 = vtanh.f32 %v370_v29 }
 0x152   : > { %v367_v32 = vpop.f32.mrf.mxu2 }
 0x153   : > { %v667_v33 = vpop.eup %666  ;;  %v371_v34 = vadd.f32 %v367_v32, %v337_v31 }
 0x154   : > { %574 = vmatmul.msk.f32.vlgmr.msra.gmra.mxu3 %vm265_vm0, %v667_v33 }
 0x155   : > { %668 = vtanh.f32 %v371_v34 }
 0x15b   : > { %v669_v35 = vpop.eup %668 }
 0x15c   : > { %575 = vmatmul.msk.f32.gmra.mxu3 %vm265_vm0, %v669_v35 }
 0x1d7   : > { %v404_v39 = vpop.f32.mrf.mxu3 }
 0x1d8   : > { %v410_v40 = vadd.f32 %v404_v39, %v380_v38 }
 0x1da   : > { %670 = vtanh.f32 %v410_v40 }
 0x1df   : > { %v407_v43 = vpop.f32.mrf.mxu3 }
 0x1e0   : > { %v671_v44 = vpop.eup %670  ;;  %v411_v45 = vadd.f32 %v407_v43, %v377_v42 }
 0x1e1   : > { %576 = vmatmul.msk.f32.vlgmr.msrb.gmra.mxu0 %vm265_vm0, %v671_v44 }
 0x1e2   : > { %672 = vtanh.f32 %v411_v45 }
 0x1e8   : > { %v673_v46 = vpop.eup %672 }
 0x1e9   : > { %577 = vmatmul.msk.f32.gmra.mxu0 %vm265_vm0, %v673_v46 }
 0x25e   : > { %v437_v47 = vpop.f32.mrf.mxu0 }
 0x25f   : > { %v443_v48 = vadd.f32 %v437_v47, %v290_v14 }
 0x261   : > { %674 = vtanh.f32 %v443_v48 }
 0x266   : > { %v440_v49 = vpop.f32.mrf.mxu0 }
 0x267   : > { %v675_v50 = vpop.eup %674  ;;  %v444_v51 = vadd.f32 %v440_v49, %v293_v17 }
 0x268   : > { %447 = vst.msk [vmem:[%s250_s24] sm:$0xff] %vm265_vm0, %v675_v50 }
 0x269   : > { %676 = vtanh.f32 %v444_v51 }
 0x26f   : > { %v677_v52 = vpop.eup %676 }
 0x270   : > { %448 = vst.msk [vmem:[%s250_s24 + $0x8] sm:$0xff] %vm265_vm0, %v677_v52 }
 0x271   : > { %795 = shalt.err (!%p792_p10)
}
 0x272   : > { %s845_s20 = smov 128   ;;  %s846_s6 = smov 8  }
 0x273   : > { %599 = dma.vmem_to_hbm [thread:$0]  (%p944_p3), %s463_s23, 256, %s465_s25, %s450_s19, %s845_s20, %s845_s20, %s846_s6  }
 0x274 PF: > { %s479_s7 = sand.u32 1, %s826_s15   ;;  %p1052_p12 = scmp.ge.s32.totalorder %s838_s18, 2 }
 0x275   : > { %s480_s30 = scalar_lea.sflag [#allocation4], %s479_s7 }
 0x276   : > { %p613_p13 = pnand %p1052_p12, %p907_p6 }
 0x278   : > { %p614_p0 = pneg %p613_p13 }
 0x27a   : > { %821 = dma.done.wait (%p614_p0), %s480_s30, 256  }
 0x27b   : > { %823 = vsyncadd (%p614_p0), %s480_s30, 4294967040  ;;  %p18_p5 = scmp.ge.s32.totalorder %s934_s10, 4   ;;  %s1053_s15 = smov %s830_s16 }
 0x27c   : > { %s1054_s16 = smov %s834_s17  ;;  %s1055_s17 = smov %s950_s14 }
 0x27d   : > { %s1056_s18 = smov %s934_s10  ;;  %20 = sbr.rel (!%p18_p5) target bundleno = 6 (0x6), region = 89 }
 0x282   :  { %486 = vsyncpa [#allocation3], 1 }
 0x283   :  { %488 = vsyncpa [#allocation3 + $0x1], 1 }
 0x284   :  { %489 = vsyncpa [#allocation6], 1 }
 0x285   :  { %490 = vsyncpa [#allocation4], 1 }
 0x286   :  { %492 = vsyncpa [#allocation4 + $0x1], 1 }

</bundles_post_ra>
